<compile_context>
chip_gen: v6e
topology: v6e:2x2x1
jax: 0.10.0
libtpu: 0.0.40
codegen_flags: <defaults>
</compile_context>

<pallas_src>
import functools

import jax
import jax.numpy as jnp
from jax.experimental import pallas as pl
from jax.experimental.pallas import tpu as pltpu


# ------------------------------- utilities -------------------------------- #

def _round_up(x, m):
    return ((x + m - 1) // m) * m


def _pick_batch_tile(B):
    # Sublane-aligned batch tile; capped so (bt*tl, 128) conv temp stays small.
    return min(128, _round_up(B, 8))


def _pick_len_tile(L_out):
    # Multiple of 16 (bf16 sublane packing) so in-kernel reshapes are layout
    # no-ops; capped to keep the per-step patch block modest.
    return min(128, _round_up(L_out, 16))


def _vmem_limit_bytes():
    # Generation-aware VMEM budget: ~3/4 of physical, capped at 100 MiB
    # (v5e/v6e: 128 MiB -> 96 MiB; v7x: 64 MiB -> 48 MiB).
    cap = 64 * 1024 * 1024
    try:
        info = pltpu.get_tpu_info()
        cap = getattr(info, "vmem_capacity_bytes", cap) or cap
    except Exception:
        pass
    return int(min(cap - cap // 4, 100 * 1024 * 1024))


# ----------------------------- Pallas kernel ------------------------------ #

def _cnn_multi_kernel(p_ref, w_ref, bc_ref, wh_ref, bh_ref, o_ref, maxacc_ref):
    """One (batch-tile, length-tile) step of the fused multi-sequence CNN.

    p_ref   : (bt, tl, P_pad)   bf16 im2col patches (lane-dense, P padded to 128)
    w_ref   : (P_pad, NC_pad)   bf16 block-diagonal conv weights (zero padded)
    bc_ref  : (1, NC_pad)       f32 conv bias (zero padded)
    wh_ref  : (NC_pad, D_pad)   f32 head weights (zero padded)
    bh_ref  : (1, D_pad)        f32 head bias (zero padded)
    o_ref   : (bt, D_pad)       f32 output tile (resident across the L axis)
    maxacc_ref : (bt, NC_pad)   f32 running max-pool scratch
    """
    l = pl.program_id(1)
    bt, tl, p_pad = p_ref.shape
    nc_pad = w_ref.shape[1]

    # One tall MXU matmul per step: all N branches and K taps fused.
    patches = p_ref[...].reshape(bt * tl, p_pad)
    conv = jnp.dot(patches, w_ref[...],
                   preferred_element_type=jnp.float32)       # (bt*tl, NC_pad)
    tile_max = jnp.max(conv.reshape(bt, tl, nc_pad), axis=1)  # (bt, NC_pad)

    @pl.when(l == 0)
    def _init():
        maxacc_ref[...] = tile_max

    @pl.when(l > 0)
    def _accumulate():
        maxacc_ref[...] = jnp.maximum(maxacc_ref[...], tile_max)

    @pl.when(l == pl.num_programs(1) - 1)
    def _finalize():
        # bias + ReLU after the global max-pool (exactly equivalent), then the
        # linear head.  Everything lane-dense -> one unmasked (bt, 128) store.
        feat = jnp.maximum(maxacc_ref[...] + bc_ref[...], 0.0)
        out = jnp.dot(feat, wh_ref[...],
                      preferred_element_type=jnp.float32) + bh_ref[...]
        o_ref[...] = out.astype(o_ref.dtype)


def cnn_multi_forward(patches, w_blk, bconv, whead, bhead, *, block_b, block_l):
    """Runs the fused kernel on pre-padded, lane-dense operands."""
    Bp, Lp, P_pad = patches.shape
    NC_pad = w_blk.shape[1]
    D_pad = whead.shape[1]
    assert Bp % block_b == 0 and Lp % block_l == 0

    grid = (Bp // block_b, Lp // block_l)

    flops = 2 * Bp * Lp * P_pad * NC_pad + 2 * Bp * NC_pad * D_pad
    bytes_accessed = int(
        patches.size * patches.dtype.itemsize
        + w_blk.size * w_blk.dtype.itemsize
        + bconv.size * bconv.dtype.itemsize
        + whead.size * whead.dtype.itemsize
        + bhead.size * bhead.dtype.itemsize
        + Bp * D_pad * 4)

    return pl.pallas_call(
        _cnn_multi_kernel,
        out_shape=jax.ShapeDtypeStruct((Bp, D_pad), jnp.float32),
        grid=grid,
        in_specs=[
            pl.BlockSpec((block_b, block_l, P_pad), lambda b, l: (b, l, 0)),
            pl.BlockSpec(w_blk.shape, lambda b, l: (0, 0)),
            pl.BlockSpec(bconv.shape, lambda b, l: (0, 0)),
            pl.BlockSpec(whead.shape, lambda b, l: (0, 0)),
            pl.BlockSpec(bhead.shape, lambda b, l: (0, 0)),
        ],
        out_specs=pl.BlockSpec((block_b, D_pad), lambda b, l: (b, 0)),
        scratch_shapes=[pltpu.VMEM((block_b, NC_pad), jnp.float32)],
        compiler_params=pltpu.CompilerParams(
            dimension_semantics=("parallel", "arbitrary"),
            vmem_limit_bytes=_vmem_limit_bytes()),
        cost_estimate=pl.CostEstimate(
            flops=flops, transcendentals=0, bytes_accessed=bytes_accessed),
    )(patches, w_blk, bconv, whead, bhead)


# --------------------------- synthetic cnn_multi --------------------------- #

class CnnMulti:
    """Synthetic stand-in for the wrapped drg_tools cnn_multi model."""

    def __init__(self, wconv, bconv, whead, bhead, *, mxu_dtype=jnp.bfloat16,
                 block_b=None, block_l=None):
        N, K, Cin, Cout = wconv.shape
        self.N, self.K, self.Cin, self.Cout = N, K, Cin, Cout
        self.Dout = whead.shape[1]
        self.mxu_dtype = mxu_dtype
        self.block_b = block_b
        self.block_l = block_l

        self.P = K * N * Cin                      # im2col contraction width
        self.P_pad = _round_up(self.P, 128)       # lane-dense contraction
        self.NC = N * Cout
        self.NC_pad = _round_up(self.NC, 128)     # lane-dense conv columns
        self.D_pad = _round_up(self.Dout, 128)    # lane-dense output columns

        # Block-diagonal conv weights: all N branches / K taps in one matmul.
        # Row index p = k*(N*Cin) + n*Cin + c ; column index = n*Cout + o.
        # Zero-padded to (128, 128): padding is free zeros in HBM and removes
        # all masked stores / partial MXU columns.
        w_blk = jnp.zeros((self.P_pad, self.NC_pad), mxu_dtype)
        wconv = wconv.astype(mxu_dtype)
        for n in range(N):
            for k in range(K):
                r0 = k * N * Cin + n * Cin
                w_blk = w_blk.at[r0:r0 + Cin,
                                 n * Cout:(n + 1) * Cout].set(wconv[n, k])
        self.w_blk = w_blk
        self.bconv_pad = jnp.zeros((1, self.NC_pad), jnp.float32
                                   ).at[0, :self.NC].set(
                                       bconv.reshape(-1).astype(jnp.float32))
        self.whead_pad = jnp.zeros((self.NC_pad, self.D_pad), jnp.float32
                                   ).at[:self.NC, :self.Dout].set(
                                       whead.astype(jnp.float32))
        self.bhead_pad = jnp.zeros((1, self.D_pad), jnp.float32
                                   ).at[0, :self.Dout].set(
                                       bhead.reshape(-1).astype(jnp.float32))

    def __call__(self, x_list):
        # NOTE: in production this preprocessing + the pallas_call would sit
        # under one jax.jit so the im2col fuses; kept eager for the demo.
        assert len(x_list) == self.N
        N, K, Cin = self.N, self.K, self.Cin
        B, L, _ = x_list[0].shape
        L_out = L - K + 1

        # Lane-dense im2col in XLA: (B, L_out, P) with p = k*(N*Cin)+n*Cin+c,
        # matching the block-diagonal weight rows.  One-hot DNA is exact bf16.
        xc = jnp.concatenate([x.astype(self.mxu_dtype) for x in x_list],
                             axis=-1)                           # (B, L, N*Cin)
        patches = jnp.concatenate(
            [xc[:, k:k + L_out, :] for k in range(K)], axis=-1)  # (B, L_out, P)

        bt = self.block_b or _pick_batch_tile(B)
        tl = self.block_l or _pick_len_tile(L_out)

        # Pad L_out to a tile multiple with EDGE rows: a duplicated patch row
        # reproduces an existing conv row, so the global max is unchanged.
        Lp = _round_up(L_out, tl)
        if Lp > L_out:
            patches = jnp.pad(patches, ((0, 0), (0, Lp - L_out), (0, 0)),
                              mode="edge")
        # Pad contraction to 128 lanes with zeros (zero * anything = 0).
        if self.P_pad > self.P:
            patches = jnp.pad(patches,
                              ((0, 0), (0, 0), (0, self.P_pad - self.P)))
        # Pad batch with zero rows so no grid step touches uninitialized data.
        Bp = _round_up(B, bt)
        if Bp > B:
            patches = jnp.pad(patches, ((0, Bp - B), (0, 0), (0, 0)))

        out = cnn_multi_forward(patches, self.w_blk, self.bconv_pad,
                                self.whead_pad, self.bhead_pad,
                                block_b=bt, block_l=tl)
        return out[:B, :self.Dout]


# --------------------------- wrapper semantics ----------------------------- #

class CnnMultiDeepliftWrapper:
    """JAX/Pallas port of cnn_multi_deeplift_wrapper (list re-assembly)."""

    def __init__(self, model, N=2, n=0):
        self.model = model
        self.N = N
        self.n = n

    def __call__(self, X, args):
        # Reproduce the exact list re-assembly of the PyTorch forward().
        x = []
        t = 0
        for i in range(self.N):
            if i == self.n:
                x.append(X)
                t = 1
            else:
                x.append(args[i - t])
        return self.model(x)


# ------------------------------- reference --------------------------------- #

def _reference_forward(x_list, wconv, bconv, whead, bhead):
    """Plain-JAX reference (original op order: conv -> bias -> ReLU -> pool)."""
    N, K, Cin, Cout = wconv.shape
    feats = []
    for n in range(N):
        xn = x_list[n].astype(jnp.float32)
        B, L, _ = xn.shape
        L_out = L - K + 1
        acc = jnp.zeros((B, L_out, Cout), jnp.float32)
        for k in range(K):
            acc = acc + jnp.einsum("bli,io->blo", xn[:, k:k + L_out, :],
                                   wconv[n, k].astype(jnp.float32))
        acc = jnp.maximum(acc + bconv[n].astype(jnp.float32)[None, None, :], 0.0)
        feats.append(jnp.max(acc, axis=1))
    f = jnp.concatenate(feats, axis=-1)
    return f @ whead.astype(jnp.float32) + bhead.reshape(1, -1).astype(jnp.float32)


# -------------------------------- main ------------------------------------- #

if __name__ == "__main__":
    # N=2 one-hot DNA sequences (channels-last (B, L, Cin)), small shapes.
    N, n_idx = 2, 0
    B, L, Cin = 32, 128, 4
    Cout, K, Dout = 32, 5, 8

    key = jax.random.PRNGKey(0)
    k1, k2, k3, k4, k5, k6 = jax.random.split(key, 6)

    # Deterministic synthetic parameters for the wrapped cnn_multi model.
    wconv = (0.1 * jax.random.normal(k1, (N, K, Cin, Cout), jnp.float32)
             ).astype(jnp.bfloat16)
    bconv = 0.1 * jax.random.normal(k2, (N, Cout), jnp.float32)
    whead = 0.1 * jax.random.normal(k3, (N * Cout, Dout), jnp.float32)
    bhead = 0.1 * jax.random.normal(k4, (1, Dout), jnp.float32)

    # Inputs: one-hot DNA sequences (exact in bf16).  X is the sequence of
    # interest; args holds the other N-1 sequences.
    X = jax.nn.one_hot(jax.random.randint(k5, (B, L), 0, Cin), Cin,
                       dtype=jnp.float32)
    args = [jax.nn.one_hot(jax.random.randint(k6, (B, L), 0, Cin), Cin,
                           dtype=jnp.float32)]

    # Small explicit tiles only to exercise the full pipeline (init/accumulate/
    # finalize and both grid axes -> grid (2, 2)) at these toy shapes; at
    # production shapes leave block_b/block_l unset for the larger defaults.
    model = CnnMulti(wconv, bconv, whead, bhead, block_b=16, block_l=64)
    wrapper = CnnMultiDeepliftWrapper(model, N=N, n=n_idx)

    out = jax.block_until_ready(wrapper(X, args))

    # Check against the plain-JAX reference (pre-hoist op order).
    x_list = [X if i == n_idx else args[i - 1] for i in range(N)]
    ref = _reference_forward(x_list, wconv, bconv, whead, bhead)
    assert out.shape == (B, Dout)
    assert jnp.allclose(out, ref, atol=2e-3, rtol=2e-3), float(
        jnp.max(jnp.abs(out - ref)))

    print("KERNEL_OK")
</pallas_src>

<mosaic_0001>
module attributes {stable_mosaic.version = 11 : i64} {
  func.func @_cnn_multi_kernel(%arg0: i32, %arg1: i32, %arg2: memref<16x64x128xbf16, #tpu.memory_space<vmem>>, %arg3: memref<128x128xbf16, #tpu.memory_space<vmem>>, %arg4: memref<1x128xf32, #tpu.memory_space<vmem>>, %arg5: memref<128x128xf32, #tpu.memory_space<vmem>>, %arg6: memref<1x128xf32, #tpu.memory_space<vmem>>, %arg7: memref<16x128xf32, #tpu.memory_space<vmem>>, %arg8: memref<16x128xf32, #tpu.memory_space<vmem>>) attributes {dimension_semantics = [#tpu.dimension_semantics<parallel>, #tpu.dimension_semantics<arbitrary>], iteration_bounds = array<i64: 2, 2>, scalar_prefetch = 0 : i64, scratch_operands = 1 : i64, tpu.core_type = #tpu.core_type<tc>, window_params = [{transform_indices = @transform_0, window_bounds = array<i64: 16, 64, 128>}, {pipeline_mode = #tpu.pipeline_mode<synchronous>, transform_indices = @transform_1, window_bounds = array<i64: 128, 128>}, {pipeline_mode = #tpu.pipeline_mode<synchronous>, transform_indices = @transform_2, window_bounds = array<i64: 1, 128>}, {pipeline_mode = #tpu.pipeline_mode<synchronous>, transform_indices = @transform_3, window_bounds = array<i64: 128, 128>}, {pipeline_mode = #tpu.pipeline_mode<synchronous>, transform_indices = @transform_4, window_bounds = array<i64: 1, 128>}, {transform_indices = @transform_5, window_bounds = array<i64: 16, 128>}]} {
    %c0 = arith.constant 0 : index
    %c0_0 = arith.constant 0 : index
    %c0_1 = arith.constant 0 : index
    %0 = vector.load %arg2[%c0, %c0_0, %c0_1] : memref<16x64x128xbf16, #tpu.memory_space<vmem>>, vector<16x64x128xbf16>
    %1 = vector.shape_cast %0 : vector<16x64x128xbf16> to vector<1024x128xbf16>
    %c0_2 = arith.constant 0 : index
    %c0_3 = arith.constant 0 : index
    %2 = vector.load %arg3[%c0_2, %c0_3] : memref<128x128xbf16, #tpu.memory_space<vmem>>, vector<128x128xbf16>
    %cst = arith.constant dense<0.000000e+00> : vector<1024x128xf32>
    %3 = tpu.matmul %1, %2, %cst {dimension_numbers = #tpu.dot_dimension_numbers<[1], [0], [0], [1], [0, 0, 1, 1], [], []>} : vector<1024x128xbf16>, vector<128x128xbf16>, vector<1024x128xf32> -> vector<1024x128xf32>
    %4 = vector.shape_cast %3 : vector<1024x128xf32> to vector<16x64x128xf32>
    %cst_4 = arith.constant dense<0xFF800000> : vector<16x128xf32>
    %5 = vector.multi_reduction <maximumf>, %4, %cst_4 [1] : vector<16x64x128xf32> to vector<16x128xf32>
    %c0_i32 = arith.constant 0 : i32
    %6 = arith.cmpi eq, %arg1, %c0_i32 : i32
    %7 = arith.extui %6 : i1 to i32
    %c0_i32_5 = arith.constant 0 : i32
    %8 = arith.cmpi ne, %7, %c0_i32_5 : i32
    scf.if %8 {
      %c0_9 = arith.constant 0 : index
      %c0_10 = arith.constant 0 : index
      %15 = vector.load %arg8[%c0_9, %c0_10] : memref<16x128xf32, #tpu.memory_space<vmem>>, vector<16x128xf32>
      tpu.vector_store %arg8[%c0_9, %c0_10], %5 {strides = array<i32>} : memref<16x128xf32, #tpu.memory_space<vmem>>, vector<16x128xf32>,
    } else {
    }
    %c0_i32_6 = arith.constant 0 : i32
    %9 = arith.cmpi sgt, %arg1, %c0_i32_6 : i32
    %10 = arith.extui %9 : i1 to i32
    %c0_i32_7 = arith.constant 0 : i32
    %11 = arith.cmpi ne, %10, %c0_i32_7 : i32
    scf.if %11 {
      %c0_9 = arith.constant 0 : index
      %c0_10 = arith.constant 0 : index
      %15 = vector.load %arg8[%c0_9, %c0_10] : memref<16x128xf32, #tpu.memory_space<vmem>>, vector<16x128xf32>
      %16 = arith.maximumf %15, %5 : vector<16x128xf32>
      %c0_11 = arith.constant 0 : index
      %c0_12 = arith.constant 0 : index
      %17 = vector.load %arg8[%c0_11, %c0_12] : memref<16x128xf32, #tpu.memory_space<vmem>>, vector<16x128xf32>
      tpu.vector_store %arg8[%c0_11, %c0_12], %16 {strides = array<i32>} : memref<16x128xf32, #tpu.memory_space<vmem>>, vector<16x128xf32>,
    } else {
    }
    %c1_i32 = arith.constant 1 : i32
    %12 = arith.cmpi eq, %arg1, %c1_i32 : i32
    %13 = arith.extui %12 : i1 to i32
    %c0_i32_8 = arith.constant 0 : i32
    %14 = arith.cmpi ne, %13, %c0_i32_8 : i32
    scf.if %14 {
      %c0_9 = arith.constant 0 : index
      %c0_10 = arith.constant 0 : index
      %15 = vector.load %arg8[%c0_9, %c0_10] : memref<16x128xf32, #tpu.memory_space<vmem>>, vector<16x128xf32>
      %c0_11 = arith.constant 0 : index
      %c0_12 = arith.constant 0 : index
      %16 = vector.load %arg4[%c0_11, %c0_12] : memref<1x128xf32, #tpu.memory_space<vmem>>, vector<1x128xf32>
      %17 = vector.broadcast %16 : vector<1x128xf32> to vector<16x128xf32>
      %18 = arith.addf %15, %17 : vector<16x128xf32>
      %cst_13 = arith.constant 0.000000e+00 : f32
      %19 = vector.broadcast %cst_13 : f32 to vector<16x128xf32>
      %20 = arith.maximumf %18, %19 : vector<16x128xf32>
      %c0_14 = arith.constant 0 : index
      %c0_15 = arith.constant 0 : index
      %21 = vector.load %arg5[%c0_14, %c0_15] : memref<128x128xf32, #tpu.memory_space<vmem>>, vector<128x128xf32>
      %cst_16 = arith.constant dense<0.000000e+00> : vector<16x128xf32>
      %22 = tpu.matmul %20, %21, %cst_16 {dimension_numbers = #tpu.dot_dimension_numbers<[1], [0], [0], [1], [0, 0, 1, 1], [], []>} : vector<16x128xf32>, vector<128x128xf32>, vector<16x128xf32> -> vector<16x128xf32>
      %c0_17 = arith.constant 0 : index
      %c0_18 = arith.constant 0 : index
      %23 = vector.load %arg6[%c0_17, %c0_18] : memref<1x128xf32, #tpu.memory_space<vmem>>, vector<1x128xf32>
      %24 = vector.broadcast %23 : vector<1x128xf32> to vector<16x128xf32>
      %25 = arith.addf %22, %24 : vector<16x128xf32>
      %c0_19 = arith.constant 0 : index
      %c0_20 = arith.constant 0 : index
      %26 = vector.load %arg7[%c0_19, %c0_20] : memref<16x128xf32, #tpu.memory_space<vmem>>, vector<16x128xf32>
      tpu.vector_store %arg7[%c0_19, %c0_20], %25 {strides = array<i32>} : memref<16x128xf32, #tpu.memory_space<vmem>>, vector<16x128xf32>,
    } else {
    }
    return
  }
  func.func @transform_0(%arg0: i32, %arg1: i32) -> (i32, i32, i32) {
    %c0_i32 = arith.constant 0 : i32
    %c0_i32_0 = arith.constant 0 : i32
    return %arg0, %arg1, %c0_i32 : i32, i32, i32
  }
  func.func @transform_1(%arg0: i32, %arg1: i32) -> (i32, i32) {
    %c0_i32 = arith.constant 0 : i32
    %c0_i32_0 = arith.constant 0 : i32
    %c0_i32_1 = arith.constant 0 : i32
    return %c0_i32, %c0_i32_0 : i32, i32
  }
  func.func @transform_2(%arg0: i32, %arg1: i32) -> (i32, i32) {
    %c0_i32 = arith.constant 0 : i32
    %c0_i32_0 = arith.constant 0 : i32
    %c0_i32_1 = arith.constant 0 : i32
    return %c0_i32, %c0_i32_0 : i32, i32
  }
  func.func @transform_3(%arg0: i32, %arg1: i32) -> (i32, i32) {
    %c0_i32 = arith.constant 0 : i32
    %c0_i32_0 = arith.constant 0 : i32
    %c0_i32_1 = arith.constant 0 : i32
    return %c0_i32, %c0_i32_0 : i32, i32
  }
  func.func @transform_4(%arg0: i32, %arg1: i32) -> (i32, i32) {
    %c0_i32 = arith.constant 0 : i32
    %c0_i32_0 = arith.constant 0 : i32
    %c0_i32_1 = arith.constant 0 : i32
    return %c0_i32, %c0_i32_0 : i32, i32
  }
  func.func @transform_5(%arg0: i32, %arg1: i32) -> (i32, i32) {
    %c0_i32 = arith.constant 0 : i32
    %c0_i32_0 = arith.constant 0 : i32
    return %arg0, %c0_i32 : i32, i32
  }
}

</mosaic_0001>

<bundles_post_ra>
// kernel: tpu_custom_call.1
= control target key start
LH: loop header
LB: loop body
LE: loop exit
PB: predicated region body
PF: predicated region fallthrough
CT: control target
= control target key end

     0   :  { %s3179_s0 = inlined_call_operand.hbm [shape: bf16[32,128,128], index: 0, kind: input, shape index: {}]   ;;  %s3180_s1 = inlined_call_operand.hbm [shape: bf16[128,128], index: 1, kind: input, shape index: {}]   ;;  %s3181_s2 = inlined_call_operand.vmem [shape: f32[1,128], index: 2, kind: input, shape index: {}]   ;;  %s3182_s3 = inlined_call_operand.hbm [shape: f32[128,128], index: 3, kind: input, shape index: {}]   ;;  %s3183_s4 = inlined_call_operand.vmem [shape: f32[1,128], index: 4, kind: input, shape index: {}]   ;;  %s3184_s5 = inlined_call_operand.hbm [shape: f32[32,128], index: 5, kind: output, shape index: {}]  }
   0x1   :  { %3194 = sst [smem:[#allocation23_spill]] %s3180_s1 }
   0x2   :  { %3195 = sst [smem:[#allocation24_spill]] %s3182_s3 }
   0x3   :  { %10 = vsyncpa [#allocation4], 0 }
   0x4   :  { %12 = vsyncpa [#allocation4 + $0x1], 0 }
   0x5   :  { %13 = vsyncpa [#allocation7], 0 }
   0x6   :  { %14 = vsyncpa [#allocation5], 0 }
   0x7   :  { %16 = vsyncpa [#allocation5 + $0x1], 0  ;;  %s2797_s18 = smov 0   ;;  %s2799_s19 = smov 0  }
   0x8   :  { %s2801_s20 = smov 0   ;;  %s2803_s21 = smov 0  }
   0x9   :  { %s2805_s22 = smov 0   ;;  %s2807_s23 = smov 0  }
   0xa   :  { %s2809_s24 = smov 0   ;;  %s2811_s25 = smov 0  }
   0xb   :  { %s2813_s26 = smov 0   ;;  %s2815_s27 = smov 0  }
   0xc   :  { %s2817_s28 = smov 0  }
   0xd LB: > { %3196 = sst [smem:[#allocation16_spill]] %s2710_s18  ;;  %s1978_s29 = sadd.s32 4294967295, %s2750_s28   ;;  %s2750_s28 = sphi %s2817_s28, %s22_s28   ;;  %s2746_s27 = sphi %s2815_s27, %s3231_s27   ;;  %s2742_s26 = sphi %s2813_s26, %s3230_s26   ;;  %s2738_s25 = sphi %s2811_s25, %s3229_s25   ;;  %s2734_s24 = sphi %s2809_s24, %s3228_s24   ;;  %s2730_s23 = sphi %s2807_s23, %s3227_s23   ;;  %s2726_s22 = sphi %s2805_s22, %s3226_s22   ;;  %s2722_s21 = sphi %s2803_s21, %s3225_s21   ;;  %s2718_s20 = sphi %s2801_s20, %s3219_s20   ;;  %s2714_s19 = sphi %s2799_s19, %s3224_s19   ;;  %s2710_s18 = sphi %s2797_s18, %s3223_s18  }
   0xe   : > { %3197 = sst [smem:[#allocation17_spill]] %s2718_s20  ;;  %s1979_s30 = sadd.s32 4294967294, %s2750_s28  }
   0xf   : > { %s31_s6 = sadd.s32 1, %s2742_s26  ;;  %s34_s7 = sadd.s32 1, %s2746_s27 }
  0x10   : > { %p32_p0 = scmp.ge.s32.totalorder %s31_s6, 2  ;;  %s43_s8 = sadd.s32 1, %s2730_s23 }
  0x11   : > { %p50_p1 = scmp.ne.s32.totalorder %s2730_s23, %s2726_s22  ;;  %p51_p2 = scmp.eq.s32.totalorder %s2750_s28, 0 }
  0x12   : > { %s3233_s6 = smov (%p32_p0, %s31_s6), 0  ;;  %s3235_s7 = smov (!%p32_p0, %s34_s7), %s2746_s27 }
  0x13   : > { %3198 = sst [smem:[#allocation18_spill]] %s3233_s6  ;;  %s39_s9 = ssub.s32 %s2742_s26, %s3233_s6 }
  0x14   : > { %p2863_p3 = por %p51_p2, %p50_p1  ;;  %p36_p4 = scmp.ge.s32.totalorder %s3235_s7, 2 }
  0x15   : > { %p56_p5 = scmp.ne.s32.totalorder %s2726_s22, %s2722_s21  ;;  %p2868_p6 = scmp.eq.s32.totalorder %s1978_s29, 0 }
  0x16   : > { %s153_s12 = sadd.s32 1, %s2718_s20  ;;  %s3237_s7 = smov (%p36_p4, %s3235_s7), 0 }
  0x17   : > { %s3200_s11 = scalar_select %p2868_p6, 1, 0 }
  0x18   : > { %3201 = sst [smem:[#allocation19_spill]] %s3237_s7  ;;  %p2877_p7 = por %p2868_p6, %p56_p5 }
  0x19   : > { %p163_p8 = scmp.ne.s32.totalorder %s2718_s20, %s2714_s19  ;;  %s38_s14 = ssub.s32 %s2746_s27, %s3237_s7 }
  0x1a   : > { %s3202_s13 = scalar_select %p2877_p7, 1, 0 }
  0x1b   : > { %p164_p9 = scmp.eq.s32.totalorder %s1978_s29, 3  ;;  %s40_s15 = sor.u32 %s39_s9, %s38_s14 }
  0x1c   : > { %p151_p10 = scmp.eq.s32.totalorder %s38_s14, 0  ;;  %p41_p11 = scmp.eq.s32.totalorder %s40_s15, 0 }
  0x1d   : > { %p2885_p12 = por %p164_p9, %p163_p8  ;;  %p169_p13 = scmp.ne.s32.totalorder %s2714_s19, %s2710_s18 }
  0x1e   : > { %s2890_s17 = scalar_select %p151_p10, %s2718_s20, %s153_s12  }
  0x1f   : > { %s3203_s16 = scalar_select %p2885_p12, 1, 0 }
  0x20   : > { %3204 = sst [smem:[#allocation20_spill]] %s2890_s17  ;;  %p170_p0 = scmp.eq.s32.totalorder %s1979_s30, 3 }
  0x21   : > { %s2893_s21 = scalar_select %p41_p11, %s2730_s23, %s43_s8  }
  0x22   : > { %p1980_p1 = scmp.ge.s32.totalorder %s2750_s28, 1  ;;  %p177_p2 = scmp.lt.s32.totalorder %s2750_s28, 5 }
  0x23   : > { %3205 = sst [smem:[#allocation21_spill]] %s2893_s21  ;;  %p2899_p4 = por %p170_p0, %p169_p13 }
  0x24   : > { %p2903_p5 = pnand %p1980_p1, %p177_p2  ;;  %s2752_s9 = smov [#allocation6]  }
  0x25   : > { %s3206_s6 = scalar_select %p2899_p4, 1, 0 }
  0x26   : > { %s189_s14 = sshll.u32 %s2752_s9, 4  ;;  %p2384_p8 = pneg %p2903_p5  ;;  %s190_s14 = int_to_ptr.vmem [resolvable:$true] %s189_s14 }
  0x27   : > { %3207 = sst [smem:[#allocation22_spill]] %s3206_s6  ;;  %s2753_s30 = smov [#allocation8]  }
  0x28   : > { %p2911_p9 = pnand %p2384_p8, %p2868_p6  ;;  %s205_s12 = sshll.u32 %s2753_s30, 4  ;;  %s206_s12 = int_to_ptr.vmem [resolvable:$true] %s205_s12 }
  0x29   : > { %s2585_s15 = scalar_lea.vmem %s190_s14, 1024  ;;  %p2593_p1 = scmp.lt.s32.totalorder %s190_s14, %s190_s14 }
  0x2a   : > { %p2576_p10 = pneg %p2911_p9  ;;  %p2586_p11 = scmp.ne.s32.totalorder %s190_s14, %s2585_s15 }
  0x2b   : > { %p2594_p2 = scmp.lt.s32.totalorder %s2585_s15, %s2585_s15 }
  0x2c   : > { %p2588_p13 = pnand %p2586_p11, %p2576_p10 }
  0x2d   : > { %p2595_p4 = por %p2594_p2, %p2593_p1 }
  0x2e   : > { %p2589_p0 = pneg %p2588_p13 }
  0x30   : > { %p2596_p8 = pnand %p2595_p4, %p2589_p0 }
  0x32   : > { %2599 = shalt.err (!%p2596_p8)
}
  0x33   : > { %s2754_s9 = smov 64   ;;  %s2755_s7 = smov 4  }
  0x34   : > { %s3210_s1 = sld [smem:[#allocation23_spill]]  ;;  %s2611_s17 = scalar_lea.vmem %s206_s12, 2048 }
  0x35   : > { %p2612_p12 = scmp.ne.s32.totalorder %s206_s12, %s2611_s17  ;;  %p2619_p6 = scmp.lt.s32.totalorder %s206_s12, %s206_s12 }
  0x36   : > { %p2620_p7 = scmp.lt.s32.totalorder %s2611_s17, %s2611_s17 }
  0x37   : > { %p2614_p11 = pnand %p2612_p12, %p2576_p10 }
  0x38   : > { %p2621_p1 = por %p2620_p7, %p2619_p6 }
  0x39   : > { %p2615_p13 = pneg %p2614_p11 }
  0x3a   : > { %2387 = dma.hbm_to_vmem [thread:$0]  (!%p2911_p9), %s3210_s1, 1024, %s190_s14, [#allocation7], %s2754_s9, %s2754_s9, %s2755_s7  }
  0x3b   : > { %p2622_p4 = pnand %p2621_p1, %p2615_p13 }
  0x3d   : > { %2625 = shalt.err (!%p2622_p4)
}
  0x3e   : > { %s2756_s15 = smov 128   ;;  %s2757_s20 = smov 8  }
  0x3f   : > { %s3211_s3 = sld [smem:[#allocation24_spill]]  ;;  %p1983_p0 = scmp.ge.s32.totalorder %s2750_s28, 4 }
  0x41   : > { %218 = sbr.rel (%p1983_p0) target bundleno = 86 (0x56), region = 32 }
  0x45   : > { %2390 = dma.hbm_to_vmem [thread:$0]  (!%p2911_p9), %s3211_s3, 2048, %s206_s12, [#allocation7], %s2756_s15, %s2756_s15, %s2757_s20  }
  0x46   : > { %s222_s7 = sand.u32 1, %s2730_s23   ;;  %s1986_s17 = sshll.u32 %s2742_s26, 3 }
  0x47   : > { %s1984_s21 = sshll.u32 %s222_s7, 9  ;;  %s2078_s14 = sshll.u32 %s2746_s27, 8 }
  0x48   : > { %s233_s8 = sadd.s32 %s2078_s14, %s1986_s17  ;;  %s226_s9 = scalar_lea.vmem [#allocation3], %s1984_s21 }
  0x49   : > { %s248_s18 = sshll.u32 %s226_s9, 4  ;;  %s1988_s20 = sshll.u32 %s233_s8, 6  ;;  %s249_s18 = int_to_ptr.vmem [resolvable:$true] %s248_s18 }
  0x4a   : > { %s2369_s6 = scalar_select %p2863_p3, [#allocation0], [#allocation12] }
  0x4b   : > { %s2758_s12 = smov 1024   ;;  %s2759_s15 = smov 512  }
  0x4c   : > { %2370 = sst [smem:[#allocation11]] (%p2863_p3), %s2758_s12  ;;  %s2760_s1 = smov 8  }
  0x4d   : > { %s240_s30 = sld [smem:[%s2369_s6]]   ;;  %s2761_s17 = smov 64  }
  0x4e   : > { %2371 = sst [smem:[#allocation11 + $0x1]] (%p2863_p3), %s2759_s15  ;;  %s235_s8 = scalar_lea.hbm %s3179_s0, %s1988_s20 }
  0x4f   : > { %2372 = sst [smem:[#allocation11 + $0x2]] (%p2863_p3), %s2760_s1  ;;  %s2762_s9 = smov 4  }
  0x50   : > { %2373 = sst [smem:[#allocation11 + $0x3]] (%p2863_p3), %s2761_s17  ;;  %s223_s3 = scalar_lea.sflag [#allocation4], %s222_s7 }
  0x51   : > { %2374 = sst [smem:[#allocation11 + $0x4]] (%p2863_p3), %s2761_s17  ;;  %s2763_s15 = smov 131072  }
  0x52   : > { %2375 = sst [smem:[#allocation11 + $0x5]] (%p2863_p3), %s2762_s9 }
  0x53   : > { %s1989_s6 = sshll.u32 %s240_s30, 26 }
  0x54   : > { %s1990_s12 = sadd.s32 134217728, %s1989_s6 }
  0x55   : > { %2376 = dma.general (%p2863_p3), %s235_s8, 8192, %s249_s18, %s223_s3, %s2763_s15, [#allocation11], %s1990_s12, 0  }
  0x56 PF: > { %273 = sbr.rel (%p2903_p5) target bundleno = 754 (0x2f2), region = 40  ;;  %s275_s1 = sand.u32 (!%p2903_p5), 1, %s2726_s22  }
  0x57   : > { %s1992_s21 = sshll.u32 (!%p2903_p5), %s275_s1, 9  ;;  %s276_s20 = scalar_lea.sflag (!%p2903_p5), [#allocation4], %s275_s1 }
  0x58   : > { %s2959_s14 = scalar_lea.vmem (!%p2903_p5), [#allocation3], %s1992_s21  ;;  %p3212_p6 = scmp.ne.s32.totalorder (!%p2903_p5), %s3202_s13, 0 }
  0x5b   : > { %2697 = dma.done.wait (%p3212_p6), %s276_s20, 8192  }
  0x5c   : > { %2699 = vsyncadd (%p3212_p6), %s276_s20, 4294959104  ;;  %p3213_p7 = scmp.ne.s32.totalorder %s3200_s11, 0 }
  0x5e   : > { %2701 = dma.done.wait (%p3213_p7), [#allocation7], 3072  }
  0x5f   : > { %2703 = vsyncadd (%p3213_p7), [#allocation7], 4294964224  ;;  %s311_s3 = sand.u32 1, %s2714_s19   ;;  %v2502_v0 = vld [vmem:[#allocation6 + $0x38] sm:$0xff]   ;;  %v2503_v1 = vld [vmem:[#allocation6 + $0x30] sm:$0xff]   ;;  %p2068_p3 = scmp.ne.s32.totalorder %s2734_s24, 0 }
  0x60   : > { %s2972_s10 = sshll.u32 %s311_s3, 4  ;;  %2170 = vmatprep.subr.bf16.mxu0 %v2502_v0  ;;  %2349 = vmatprep.subr.bf16.mxu1 %v2502_v0  ;;  %v2504_v2 = vld [vmem:[#allocation6 + $0x28] sm:$0xff]   ;;  %v2505_v3 = vld [vmem:[#allocation6 + $0x20] sm:$0xff]   ;;  %v2506_v6 = vld [vmem:[#allocation6 + $0x18] sm:$0xff]  }
  0x61   : > { %2171 = vmatpush3.bf16.msra.mxu0 %v2502_v0  ;;  %2357 = vmatpush3.bf16.msra.mxu1 %v2502_v0  ;;  %v2510_v4 = vld [vmem:[%s2959_s14] sm:$0xff]   ;;  %v2507_v7 = vld [vmem:[#allocation6 + $0x10] sm:$0xff]   ;;  %v2508_v8 = vld [vmem:[#allocation6 + $0x8] sm:$0xff]   ;;  %s3067_s11 = scalar_lea.vmem [#allocation9], %s2972_s10 }
  0x62   : > { %2172 = vmatprep.subr.bf16.mxu0 %v2503_v1  ;;  %2350 = vmatprep.subr.bf16.mxu1 %v2503_v1  ;;  %v2511_v5 = vld [vmem:[%s2959_s14 + $0x100] sm:$0xff]   ;;  %v2512_v10 = vld [vmem:[%s2959_s14 + $0x8] sm:$0xff]   ;;  %v2514_v12 = vld [vmem:[%s2959_s14 + $0x10] sm:$0xff]  }
  0x63   : > { %2186 = vmatprep.mubr.bf16.mxu0 %v2510_v4  ;;  %2250 = vmatprep.mubr.bf16.mxu1 %v2511_v5  ;;  %v2509_v9 = vld [vmem:[#allocation6] sm:$0xff]   ;;  %v2513_v11 = vld [vmem:[%s2959_s14 + $0x108] sm:$0xff]   ;;  %v2515_v13 = vld [vmem:[%s2959_s14 + $0x110] sm:$0xff]  }
  0x64   : > { %v2516_v14 = vld [vmem:[%s2959_s14 + $0x18] sm:$0xff]   ;;  %v2518_v16 = vld [vmem:[%s2959_s14 + $0x20] sm:$0xff]   ;;  %v2520_v18 = vld [vmem:[%s2959_s14 + $0x28] sm:$0xff]  }
  0x65   : > { %2173 = vmatpush3.bf16.msra.mxu0 %v2503_v1  ;;  %2358 = vmatpush3.bf16.msra.mxu1 %v2503_v1  ;;  %v2517_v15 = vld [vmem:[%s2959_s14 + $0x118] sm:$0xff]   ;;  %v2519_v17 = vld [vmem:[%s2959_s14 + $0x120] sm:$0xff]   ;;  %v2521_v19 = vld [vmem:[%s2959_s14 + $0x128] sm:$0xff]  }
  0x66   : > { %2174 = vmatprep.subr.bf16.mxu0 %v2504_v2  ;;  %2351 = vmatprep.subr.bf16.mxu1 %v2504_v2  ;;  %v2522_v20 = vld [vmem:[%s2959_s14 + $0x30] sm:$0xff]   ;;  %v2524_v22 = vld [vmem:[%s2959_s14 + $0x38] sm:$0xff]   ;;  %v2526_v24 = vld [vmem:[%s2959_s14 + $0x40] sm:$0xff]  }
  0x67   : > { %v2523_v21 = vld [vmem:[%s2959_s14 + $0x130] sm:$0xff]   ;;  %v2525_v23 = vld [vmem:[%s2959_s14 + $0x138] sm:$0xff]   ;;  %v2527_v25 = vld [vmem:[%s2959_s14 + $0x140] sm:$0xff]  }
  0x68   : > { %v2528_v26 = vld [vmem:[%s2959_s14 + $0x48] sm:$0xff]   ;;  %v2530_v28 = vld [vmem:[%s2959_s14 + $0x50] sm:$0xff]   ;;  %v2532_v30 = vld [vmem:[%s2959_s14 + $0x58] sm:$0xff]  }
  0x69   : > { %2175 = vmatpush3.bf16.msra.mxu0 %v2504_v2  ;;  %2359 = vmatpush3.bf16.msra.mxu1 %v2504_v2  ;;  %v2529_v27 = vld [vmem:[%s2959_s14 + $0x148] sm:$0xff]   ;;  %v2531_v29 = vld [vmem:[%s2959_s14 + $0x150] sm:$0xff]   ;;  %v2533_v31 = vld [vmem:[%s2959_s14 + $0x158] sm:$0xff]  }
  0x6a   : > { %2176 = vmatprep.subr.bf16.mxu0 %v2505_v3  ;;  %2352 = vmatprep.subr.bf16.mxu1 %v2505_v3  ;;  %v2534_v32 = vld [vmem:[%s2959_s14 + $0x60] sm:$0xff]   ;;  %v2536_v34 = vld [vmem:[%s2959_s14 + $0x68] sm:$0xff]   ;;  %v2538_v36 = vld [vmem:[%s2959_s14 + $0x70] sm:$0xff]  }
  0x6b   : > { %v2535_v33 = vld [vmem:[%s2959_s14 + $0x160] sm:$0xff]   ;;  %v2537_v35 = vld [vmem:[%s2959_s14 + $0x168] sm:$0xff]   ;;  %v2539_v37 = vld [vmem:[%s2959_s14 + $0x170] sm:$0xff]  }
  0x6c   : > { %v2540_v38 = vld [vmem:[%s2959_s14 + $0x78] sm:$0xff]   ;;  %v2542_v40 = vld [vmem:[%s2959_s14 + $0x80] sm:$0xff]   ;;  %v2544_v42 = vld [vmem:[%s2959_s14 + $0x88] sm:$0xff]  }
  0x6d   : > { %2177 = vmatpush3.bf16.msra.mxu0 %v2505_v3  ;;  %2360 = vmatpush3.bf16.msra.mxu1 %v2505_v3  ;;  %v2541_v39 = vld [vmem:[%s2959_s14 + $0x178] sm:$0xff]   ;;  %v2543_v41 = vld [vmem:[%s2959_s14 + $0x180] sm:$0xff]   ;;  %v2545_v43 = vld [vmem:[%s2959_s14 + $0x188] sm:$0xff]  }
  0x6e   : > { %2178 = vmatprep.subr.bf16.mxu0 %v2506_v6  ;;  %2353 = vmatprep.subr.bf16.mxu1 %v2506_v6  ;;  %v2546_v44 = vld [vmem:[%s2959_s14 + $0x90] sm:$0xff]   ;;  %v2548_v46 = vld [vmem:[%s2959_s14 + $0x98] sm:$0xff]   ;;  %v2550_v48 = vld [vmem:[%s2959_s14 + $0xa0] sm:$0xff]  }
  0x6f   : > { %v2547_v45 = vld [vmem:[%s2959_s14 + $0x190] sm:$0xff]   ;;  %v2549_v47 = vld [vmem:[%s2959_s14 + $0x198] sm:$0xff]   ;;  %v2551_v49 = vld [vmem:[%s2959_s14 + $0x1a0] sm:$0xff]  }
  0x70   : > { %v2552_v50 = vld [vmem:[%s2959_s14 + $0xa8] sm:$0xff]   ;;  %v2554_v52 = vld [vmem:[%s2959_s14 + $0xb0] sm:$0xff]   ;;  %v2556_v54 = vld [vmem:[%s2959_s14 + $0xb8] sm:$0xff]  }
  0x71   : > { %2179 = vmatpush3.bf16.msra.mxu0 %v2506_v6  ;;  %2361 = vmatpush3.bf16.msra.mxu1 %v2506_v6  ;;  %v2553_v51 = vld [vmem:[%s2959_s14 + $0x1a8] sm:$0xff]   ;;  %v2555_v53 = vld [vmem:[%s2959_s14 + $0x1b0] sm:$0xff]   ;;  %v2557_v55 = vld [vmem:[%s2959_s14 + $0x1b8] sm:$0xff]  }
  0x72   : > { %2180 = vmatprep.subr.bf16.mxu0 %v2507_v7  ;;  %2354 = vmatprep.subr.bf16.mxu1 %v2507_v7  ;;  %v2558_v56 = vld [vmem:[%s2959_s14 + $0xc0] sm:$0xff]   ;;  %v2560_v58 = vld [vmem:[%s2959_s14 + $0xc8] sm:$0xff]   ;;  %v2562_v60 = vld [vmem:[%s2959_s14 + $0xd0] sm:$0xff]  }
  0x73   : > { %v2559_v57 = vld [vmem:[%s2959_s14 + $0x1c0] sm:$0xff]   ;;  %v2561_v59 = vld [vmem:[%s2959_s14 + $0x1c8] sm:$0xff]   ;;  %v2563_v61 = vld [vmem:[%s2959_s14 + $0x1d0] sm:$0xff]  }
  0x74   : > { %v2564_v62 = vld [vmem:[%s2959_s14 + $0xd8] sm:$0xff]   ;;  %v2566_v0 = vld [vmem:[%s2959_s14 + $0xe0] sm:$0xff]   ;;  %v2568_v2 = vld [vmem:[%s2959_s14 + $0xe8] sm:$0xff]  }
  0x75   : > { %2181 = vmatpush3.bf16.msra.mxu0 %v2507_v7  ;;  %2362 = vmatpush3.bf16.msra.mxu1 %v2507_v7  ;;  %v2565_v63 = vld [vmem:[%s2959_s14 + $0x1d8] sm:$0xff]   ;;  %v2567_v1 = vld [vmem:[%s2959_s14 + $0x1e0] sm:$0xff]   ;;  %v2569_v3 = vld [vmem:[%s2959_s14 + $0x1e8] sm:$0xff]  }
  0x76   : > { %2182 = vmatprep.subr.bf16.mxu0 %v2508_v8  ;;  %2355 = vmatprep.subr.bf16.mxu1 %v2508_v8  ;;  %v2570_v4 = vld [vmem:[%s2959_s14 + $0xf0] sm:$0xff]   ;;  %v2572_v6 = vld [vmem:[%s2959_s14 + $0xf8] sm:$0xff]  }
  0x77   : > { %v2571_v5 = vld [vmem:[%s2959_s14 + $0x1f0] sm:$0xff]   ;;  %v2573_v7 = vld [vmem:[%s2959_s14 + $0x1f8] sm:$0xff]  }
  0x79   : > { %2183 = vmatpush3.bf16.msra.mxu0 %v2508_v8  ;;  %2363 = vmatpush3.bf16.msra.mxu1 %v2508_v8 }
  0x7a   : > { %2184 = vmatprep.subr.bf16.mxu0 %v2509_v9  ;;  %2356 = vmatprep.subr.bf16.mxu1 %v2509_v9 }
  0x7d   : > { %2185 = vmatpush3.bf16.msra.mxu0 %v2509_v9  ;;  %2364 = vmatpush3.bf16.msra.mxu1 %v2509_v9 }
  0x80   : > { %2187 = vmatmul.mubr.bf16.vlgmr.msra.gmra.mxu0 %v2512_v10  ;;  %2251 = vmatmul.mubr.bf16.vlgmr.msra.gmra.mxu1 %v2513_v11 }
  0x81   : > { %2190 = vmatprep.mubr.bf16.mxu0 %v2514_v12  ;;  %2254 = vmatprep.mubr.bf16.mxu1 %v2515_v13 }
  0x88   : > { %2191 = vmatmul.mubr.bf16.gmra.mxu0 %v2516_v14  ;;  %2255 = vmatmul.mubr.bf16.gmra.mxu1 %v2517_v15 }
  0x89   : > { %2194 = vmatprep.mubr.bf16.mxu0 %v2518_v16  ;;  %2258 = vmatprep.mubr.bf16.mxu1 %v2519_v17 }
  0x90   : > { %2195 = vmatmul.mubr.bf16.gmra.mxu0 %v2520_v18  ;;  %2259 = vmatmul.mubr.bf16.gmra.mxu1 %v2521_v19 }
  0x91   : > { %2198 = vmatprep.mubr.bf16.mxu0 %v2522_v20  ;;  %2262 = vmatprep.mubr.bf16.mxu1 %v2523_v21 }
  0x98   : > { %2199 = vmatmul.mubr.bf16.gmra.mxu0 %v2524_v22  ;;  %2263 = vmatmul.mubr.bf16.gmra.mxu1 %v2525_v23 }
  0x99   : > { %2202 = vmatprep.mubr.bf16.mxu0 %v2526_v24  ;;  %2266 = vmatprep.mubr.bf16.mxu1 %v2527_v25 }
  0xa0   : > { %2203 = vmatmul.mubr.bf16.gmra.mxu0 %v2528_v26  ;;  %2267 = vmatmul.mubr.bf16.gmra.mxu1 %v2529_v27 }
  0xa1   : > { %2206 = vmatprep.mubr.bf16.mxu0 %v2530_v28  ;;  %2270 = vmatprep.mubr.bf16.mxu1 %v2531_v29 }
  0xa8   : > { %2207 = vmatmul.mubr.bf16.gmra.mxu0 %v2532_v30  ;;  %2271 = vmatmul.mubr.bf16.gmra.mxu1 %v2533_v31 }
  0xa9   : > { %2210 = vmatprep.mubr.bf16.mxu0 %v2534_v32  ;;  %2274 = vmatprep.mubr.bf16.mxu1 %v2535_v33 }
  0xb0   : > { %2211 = vmatmul.mubr.bf16.gmra.mxu0 %v2536_v34  ;;  %2275 = vmatmul.mubr.bf16.gmra.mxu1 %v2537_v35 }
  0xb1   : > { %2214 = vmatprep.mubr.bf16.mxu0 %v2538_v36  ;;  %2278 = vmatprep.mubr.bf16.mxu1 %v2539_v37 }
  0xb8   : > { %2215 = vmatmul.mubr.bf16.gmra.mxu0 %v2540_v38  ;;  %2279 = vmatmul.mubr.bf16.gmra.mxu1 %v2541_v39 }
  0xb9   : > { %2218 = vmatprep.mubr.bf16.mxu0 %v2542_v40  ;;  %2282 = vmatprep.mubr.bf16.mxu1 %v2543_v41 }
  0xc0   : > { %2219 = vmatmul.mubr.bf16.gmra.mxu0 %v2544_v42  ;;  %2283 = vmatmul.mubr.bf16.gmra.mxu1 %v2545_v43 }
  0xc1   : > { %2222 = vmatprep.mubr.bf16.mxu0 %v2546_v44  ;;  %2286 = vmatprep.mubr.bf16.mxu1 %v2547_v45 }
  0xc8   : > { %2223 = vmatmul.mubr.bf16.gmra.mxu0 %v2548_v46  ;;  %2287 = vmatmul.mubr.bf16.gmra.mxu1 %v2549_v47 }
  0xc9   : > { %2226 = vmatprep.mubr.bf16.mxu0 %v2550_v48  ;;  %2290 = vmatprep.mubr.bf16.mxu1 %v2551_v49 }
  0xd0   : > { %2227 = vmatmul.mubr.bf16.gmra.mxu0 %v2552_v50  ;;  %2291 = vmatmul.mubr.bf16.gmra.mxu1 %v2553_v51 }
  0xd1   : > { %2230 = vmatprep.mubr.bf16.mxu0 %v2554_v52  ;;  %2294 = vmatprep.mubr.bf16.mxu1 %v2555_v53 }
  0xd8   : > { %2231 = vmatmul.mubr.bf16.gmra.mxu0 %v2556_v54  ;;  %2295 = vmatmul.mubr.bf16.gmra.mxu1 %v2557_v55 }
  0xd9   : > { %2234 = vmatprep.mubr.bf16.mxu0 %v2558_v56  ;;  %2298 = vmatprep.mubr.bf16.mxu1 %v2559_v57 }
  0xe0   : > { %2235 = vmatmul.mubr.bf16.gmra.mxu0 %v2560_v58  ;;  %2299 = vmatmul.mubr.bf16.gmra.mxu1 %v2561_v59 }
  0xe1   : > { %2238 = vmatprep.mubr.bf16.mxu0 %v2562_v60  ;;  %2302 = vmatprep.mubr.bf16.mxu1 %v2563_v61 }
  0xe8   : > { %2239 = vmatmul.mubr.bf16.gmra.mxu0 %v2564_v62  ;;  %2303 = vmatmul.mubr.bf16.gmra.mxu1 %v2565_v63 }
  0xe9   : > { %2242 = vmatprep.mubr.bf16.mxu0 %v2566_v0  ;;  %2306 = vmatprep.mubr.bf16.mxu1 %v2567_v1 }
  0xf0   : > { %2243 = vmatmul.mubr.bf16.gmra.mxu0 %v2568_v2  ;;  %2307 = vmatmul.mubr.bf16.gmra.mxu1 %v2569_v3 }
  0xf1   : > { %2246 = vmatprep.mubr.bf16.mxu0 %v2570_v4  ;;  %2310 = vmatprep.mubr.bf16.mxu1 %v2571_v5 }
  0xf8   : > { %2247 = vmatmul.mubr.bf16.gmra.mxu0 %v2572_v6  ;;  %2311 = vmatmul.mubr.bf16.gmra.mxu1 %v2573_v7 }
 0x140   : > { %v2188_v8 = vpop.f32.mrf.mxu0  ;;  %v2252_v9 = vpop.f32.mrf.mxu1 }
 0x142   : > { %v928_v10 = vpop.f32.mrf.mxu0  ;;  %v1184_v11 = vpop.f32.mrf.mxu1 }
 0x144   : > { %v2189_v12 = vpop.f32.mrf.mxu0  ;;  %v2253_v13 = vpop.f32.mrf.mxu1 }
 0x146   : > { %v931_v14 = vpop.f32.mrf.mxu0  ;;  %v1187_v15 = vpop.f32.mrf.mxu1 }
 0x147   : > { %v1439_v16 = vmax.f32 %v928_v10, %v931_v14  ;;  %v1543_v17 = vmax.f32 %v1184_v11, %v1187_v15 }
 0x148   : > { %v2192_v18 = vpop.f32.mrf.mxu0  ;;  %v2256_v19 = vpop.f32.mrf.mxu1 }
 0x149   : > { %v1440_v20 = vmax.f32 %v1439_v16, %v2188_v8  ;;  %v1544_v21 = vmax.f32 %v1543_v17, %v2252_v9 }
 0x14a   : > { %v944_v22 = vpop.f32.mrf.mxu0  ;;  %v1200_v23 = vpop.f32.mrf.mxu1 }
 0x14b   : > { %v1441_v24 = vmax.f32 %v1440_v20, %v2189_v12  ;;  %v1545_v25 = vmax.f32 %v1544_v21, %v2253_v13 }
 0x14c   : > { %v2193_v26 = vpop.f32.mrf.mxu0  ;;  %v2257_v27 = vpop.f32.mrf.mxu1 }
 0x14d   : > { %v1442_v28 = vmax.f32 %v1441_v24, %v944_v22  ;;  %v1546_v29 = vmax.f32 %v1545_v25, %v1200_v23 }
 0x14e   : > { %v947_v30 = vpop.f32.mrf.mxu0  ;;  %v1203_v31 = vpop.f32.mrf.mxu1 }
 0x14f   : > { %v1443_v32 = vmax.f32 %v1442_v28, %v947_v30  ;;  %v1547_v33 = vmax.f32 %v1546_v29, %v1203_v31 }
 0x150   : > { %v2196_v34 = vpop.f32.mrf.mxu0  ;;  %v2260_v35 = vpop.f32.mrf.mxu1 }
 0x151   : > { %v1444_v36 = vmax.f32 %v1443_v32, %v2192_v18  ;;  %v1548_v37 = vmax.f32 %v1547_v33, %v2256_v19 }
 0x152   : > { %v960_v38 = vpop.f32.mrf.mxu0  ;;  %v1216_v39 = vpop.f32.mrf.mxu1 }
 0x153   : > { %v1445_v40 = vmax.f32 %v1444_v36, %v2193_v26  ;;  %v1549_v41 = vmax.f32 %v1548_v37, %v2257_v27 }
 0x154   : > { %v2197_v42 = vpop.f32.mrf.mxu0  ;;  %v2261_v43 = vpop.f32.mrf.mxu1 }
 0x155   : > { %v1446_v44 = vrot.slane %v1445_v40, 4  ;;  %v1550_v45 = vrot.slane %v1549_v41, 4 }
 0x156   : > { %v963_v46 = vpop.f32.mrf.mxu0  ;;  %v1219_v47 = vpop.f32.mrf.mxu1 }
 0x157   : > { %v1447_v48 = vmax.f32 %v1445_v40, %v1446_v44  ;;  %v1551_v49 = vmax.f32 %v1549_v41, %v1550_v45  ;;  %v1452_v50 = vmax.f32 %v960_v38, %v963_v46  ;;  %v1556_v51 = vmax.f32 %v1216_v39, %v1219_v47 }
 0x158   : > { %v2200_v52 = vpop.f32.mrf.mxu0  ;;  %v2264_v53 = vpop.f32.mrf.mxu1 }
 0x159   : > { %v1448_v54 = vrot.slane %v1447_v48, 2  ;;  %v1552_v55 = vrot.slane %v1551_v49, 2  ;;  %v1453_v56 = vmax.f32 %v1452_v50, %v2196_v34  ;;  %v1557_v57 = vmax.f32 %v1556_v51, %v2260_v35 }
 0x15a   : > { %v976_v58 = vpop.f32.mrf.mxu0  ;;  %v1232_v59 = vpop.f32.mrf.mxu1 }
 0x15b   : > { %v1449_v60 = vmax.f32 %v1447_v48, %v1448_v54  ;;  %v1553_v61 = vmax.f32 %v1551_v49, %v1552_v55  ;;  %v1454_v62 = vmax.f32 %v1453_v56, %v2197_v42  ;;  %v1558_v63 = vmax.f32 %v1557_v57, %v2261_v43 }
 0x15c   : > { %v2201_v0 = vpop.f32.mrf.mxu0  ;;  %v2265_v1 = vpop.f32.mrf.mxu1 }
 0x15d   : > { %v1450_v2 = vrot.slane %v1449_v60, 1  ;;  %v1554_v3 = vrot.slane %v1553_v61, 1  ;;  %v1455_v4 = vmax.f32 %v1454_v62, %v976_v58  ;;  %v1559_v5 = vmax.f32 %v1558_v63, %v1232_v59 }
 0x15e   : > { %v979_v6 = vpop.f32.mrf.mxu0  ;;  %v1235_v7 = vpop.f32.mrf.mxu1 }
 0x15f   : > { %v3038_v8 = vmax.f32 %v1449_v60, %v1450_v2  ;;  %v3040_v9 = vmax.f32 %v1553_v61, %v1554_v3  ;;  %v1456_v10 = vmax.f32 %v1455_v4, %v979_v6  ;;  %v1560_v11 = vmax.f32 %v1559_v5, %v1235_v7 }
 0x160   : > { %v2204_v12 = vpop.f32.mrf.mxu0  ;;  %v2268_v13 = vpop.f32.mrf.mxu1 }
 0x161   : > { %v1457_v14 = vmax.f32 %v1456_v10, %v2200_v52  ;;  %v1561_v15 = vmax.f32 %v1560_v11, %v2264_v53 }
 0x162   : > { %v992_v16 = vpop.f32.mrf.mxu0  ;;  %v1248_v17 = vpop.f32.mrf.mxu1 }
 0x163   : > { %v1458_v18 = vmax.f32 %v1457_v14, %v2201_v0  ;;  %v1562_v19 = vmax.f32 %v1561_v15, %v2265_v1 }
 0x164   : > { %v2205_v20 = vpop.f32.mrf.mxu0  ;;  %v2269_v21 = vpop.f32.mrf.mxu1 }
 0x165   : > { %v1459_v22 = vrot.slane %v1458_v18, 4  ;;  %v1563_v23 = vrot.slane %v1562_v19, 4 }
 0x166   : > { %v995_v24 = vpop.f32.mrf.mxu0  ;;  %v1251_v25 = vpop.f32.mrf.mxu1 }
 0x167   : > { %v1460_v26 = vmax.f32 %v1458_v18, %v1459_v22  ;;  %v1564_v27 = vmax.f32 %v1562_v19, %v1563_v23  ;;  %v1465_v28 = vmax.f32 %v992_v16, %v995_v24  ;;  %v1569_v29 = vmax.f32 %v1248_v17, %v1251_v25 }
 0x168   : > { %v2208_v30 = vpop.f32.mrf.mxu0  ;;  %v2272_v31 = vpop.f32.mrf.mxu1 }
 0x169   : > { %v1461_v32 = vrot.slane %v1460_v26, 2  ;;  %v1565_v33 = vrot.slane %v1564_v27, 2  ;;  %v1466_v34 = vmax.f32 %v1465_v28, %v2204_v12  ;;  %v1570_v35 = vmax.f32 %v1569_v29, %v2268_v13 }
 0x16a   : > { %v1008_v36 = vpop.f32.mrf.mxu0  ;;  %v1264_v37 = vpop.f32.mrf.mxu1 }
 0x16b   : > { %v1462_v38 = vmax.f32 %v1460_v26, %v1461_v32  ;;  %v1566_v39 = vmax.f32 %v1564_v27, %v1565_v33  ;;  %v1467_v40 = vmax.f32 %v1466_v34, %v2205_v20  ;;  %v1571_v41 = vmax.f32 %v1570_v35, %v2269_v21 }
 0x16c   : > { %v2209_v42 = vpop.f32.mrf.mxu0  ;;  %v2273_v43 = vpop.f32.mrf.mxu1 }
 0x16d   : > { %v1463_v44 = vrot.slane %v1462_v38, 1  ;;  %v1567_v45 = vrot.slane %v1566_v39, 1  ;;  %v1468_v46 = vmax.f32 %v1467_v40, %v1008_v36  ;;  %v1572_v47 = vmax.f32 %v1571_v41, %v1264_v37 }
 0x16e   : > { %v1011_v48 = vpop.f32.mrf.mxu0  ;;  %v1267_v49 = vpop.f32.mrf.mxu1 }
 0x16f   : > { %v3042_v50 = vmax.f32 %v1462_v38, %v1463_v44  ;;  %v3044_v51 = vmax.f32 %v1566_v39, %v1567_v45  ;;  %v1469_v52 = vmax.f32 %v1468_v46, %v1011_v48  ;;  %v1573_v53 = vmax.f32 %v1572_v47, %v1267_v49 }
 0x170   : > { %v2212_v54 = vpop.f32.mrf.mxu0  ;;  %v2276_v55 = vpop.f32.mrf.mxu1 }
 0x171   : > { %v1470_v56 = vmax.f32 %v1469_v52, %v2208_v30  ;;  %v1574_v57 = vmax.f32 %v1573_v53, %v2272_v31 }
 0x172   : > { %v1024_v58 = vpop.f32.mrf.mxu0  ;;  %v1280_v59 = vpop.f32.mrf.mxu1 }
 0x173   : > { %v1471_v60 = vmax.f32 %v1470_v56, %v2209_v42  ;;  %v1575_v61 = vmax.f32 %v1574_v57, %v2273_v43 }
 0x174   : > { %v2213_v62 = vpop.f32.mrf.mxu0  ;;  %v2277_v63 = vpop.f32.mrf.mxu1 }
 0x175   : > { %v1472_v0 = vrot.slane %v1471_v60, 4  ;;  %v1576_v1 = vrot.slane %v1575_v61, 4 }
 0x176   : > { %v1027_v2 = vpop.f32.mrf.mxu0  ;;  %v1283_v3 = vpop.f32.mrf.mxu1 }
 0x177   : > { %v1473_v4 = vmax.f32 %v1471_v60, %v1472_v0  ;;  %v1577_v5 = vmax.f32 %v1575_v61, %v1576_v1  ;;  %v1478_v6 = vmax.f32 %v1024_v58, %v1027_v2  ;;  %v1582_v7 = vmax.f32 %v1280_v59, %v1283_v3 }
 0x178   : > { %v2216_v10 = vpop.f32.mrf.mxu0  ;;  %v2280_v11 = vpop.f32.mrf.mxu1 }
 0x179   : > { %v1474_v12 = vrot.slane %v1473_v4, 2  ;;  %v1578_v13 = vrot.slane %v1577_v5, 2  ;;  %v1479_v14 = vmax.f32 %v1478_v6, %v2212_v54  ;;  %v1583_v15 = vmax.f32 %v1582_v7, %v2276_v55 }
 0x17a   : > { %v1040_v16 = vpop.f32.mrf.mxu0  ;;  %v1296_v17 = vpop.f32.mrf.mxu1 }
 0x17b   : > { %v1475_v18 = vmax.f32 %v1473_v4, %v1474_v12  ;;  %v1579_v19 = vmax.f32 %v1577_v5, %v1578_v13  ;;  %v1480_v20 = vmax.f32 %v1479_v14, %v2213_v62  ;;  %v1584_v21 = vmax.f32 %v1583_v15, %v2277_v63 }
 0x17c   : > { %v2217_v22 = vpop.f32.mrf.mxu0  ;;  %v2281_v23 = vpop.f32.mrf.mxu1 }
 0x17d   : > { %v1476_v24 = vrot.slane %v1475_v18, 1  ;;  %v1580_v25 = vrot.slane %v1579_v19, 1  ;;  %v1481_v26 = vmax.f32 %v1480_v20, %v1040_v16  ;;  %v1585_v27 = vmax.f32 %v1584_v21, %v1296_v17 }
 0x17e   : > { %v1043_v28 = vpop.f32.mrf.mxu0  ;;  %v1299_v29 = vpop.f32.mrf.mxu1 }
 0x17f   : > { %v3046_v30 = vmax.f32 %v1475_v18, %v1476_v24  ;;  %v3048_v31 = vmax.f32 %v1579_v19, %v1580_v25  ;;  %v1482_v32 = vmax.f32 %v1481_v26, %v1043_v28  ;;  %v1586_v33 = vmax.f32 %v1585_v27, %v1299_v29 }
 0x180   : > { %v2220_v34 = vpop.f32.mrf.mxu0  ;;  %v2284_v35 = vpop.f32.mrf.mxu1 }
 0x181   : > { %v1483_v36 = vmax.f32 %v1482_v32, %v2216_v10  ;;  %v1587_v37 = vmax.f32 %v1586_v33, %v2280_v11 }
 0x182   : > { %v1056_v38 = vpop.f32.mrf.mxu0  ;;  %v1312_v39 = vpop.f32.mrf.mxu1 }
 0x183   : > { %v1484_v40 = vmax.f32 %v1483_v36, %v2217_v22  ;;  %v1588_v41 = vmax.f32 %v1587_v37, %v2281_v23 }
 0x184   : > { %v2221_v42 = vpop.f32.mrf.mxu0  ;;  %v2285_v43 = vpop.f32.mrf.mxu1 }
 0x185   : > { %v1485_v44 = vrot.slane %v1484_v40, 4  ;;  %v1589_v45 = vrot.slane %v1588_v41, 4 }
 0x186   : > { %v1059_v46 = vpop.f32.mrf.mxu0  ;;  %v1315_v47 = vpop.f32.mrf.mxu1 }
 0x187   : > { %v1486_v48 = vmax.f32 %v1484_v40, %v1485_v44  ;;  %v1590_v49 = vmax.f32 %v1588_v41, %v1589_v45  ;;  %v1491_v52 = vmax.f32 %v1056_v38, %v1059_v46  ;;  %v1595_v53 = vmax.f32 %v1312_v39, %v1315_v47 }
 0x188   : > { %v2224_v54 = vpop.f32.mrf.mxu0  ;;  %v2288_v55 = vpop.f32.mrf.mxu1 }
 0x189   : > { %v1487_v56 = vrot.slane %v1486_v48, 2  ;;  %v1591_v57 = vrot.slane %v1590_v49, 2  ;;  %v1492_v58 = vmax.f32 %v1491_v52, %v2220_v34  ;;  %v1596_v59 = vmax.f32 %v1595_v53, %v2284_v35 }
 0x18a   : > { %v1072_v60 = vpop.f32.mrf.mxu0  ;;  %v1328_v61 = vpop.f32.mrf.mxu1 }
 0x18b   : > { %v1488_v62 = vmax.f32 %v1486_v48, %v1487_v56  ;;  %v1592_v63 = vmax.f32 %v1590_v49, %v1591_v57  ;;  %v1493_v0 = vmax.f32 %v1492_v58, %v2221_v42  ;;  %v1597_v1 = vmax.f32 %v1596_v59, %v2285_v43 }
 0x18c   : > { %v2225_v2 = vpop.f32.mrf.mxu0  ;;  %v2289_v3 = vpop.f32.mrf.mxu1 }
 0x18d   : > { %v1489_v4 = vrot.slane %v1488_v62, 1  ;;  %v1593_v5 = vrot.slane %v1592_v63, 1  ;;  %v1494_v6 = vmax.f32 %v1493_v0, %v1072_v60  ;;  %v1598_v7 = vmax.f32 %v1597_v1, %v1328_v61 }
 0x18e   : > { %v1075_v10 = vpop.f32.mrf.mxu0  ;;  %v1331_v11 = vpop.f32.mrf.mxu1 }
 0x18f   : > { %v3050_v12 = vmax.f32 %v1488_v62, %v1489_v4  ;;  %v3052_v13 = vmax.f32 %v1592_v63, %v1593_v5  ;;  %v1495_v14 = vmax.f32 %v1494_v6, %v1075_v10  ;;  %v1599_v15 = vmax.f32 %v1598_v7, %v1331_v11 }
 0x190   : > { %v2228_v16 = vpop.f32.mrf.mxu0  ;;  %v2292_v17 = vpop.f32.mrf.mxu1 }
 0x191   : > { %v1496_v18 = vmax.f32 %v1495_v14, %v2224_v54  ;;  %v1600_v19 = vmax.f32 %v1599_v15, %v2288_v55 }
 0x192   : > { %v1088_v20 = vpop.f32.mrf.mxu0  ;;  %v1344_v21 = vpop.f32.mrf.mxu1 }
 0x193   : > { %v1497_v22 = vmax.f32 %v1496_v18, %v2225_v2  ;;  %v1601_v23 = vmax.f32 %v1600_v19, %v2289_v3 }
 0x194   : > { %v2229_v24 = vpop.f32.mrf.mxu0  ;;  %v2293_v25 = vpop.f32.mrf.mxu1 }
 0x195   : > { %v1498_v26 = vrot.slane %v1497_v22, 4  ;;  %v1602_v27 = vrot.slane %v1601_v23, 4 }
 0x196   : > { %v1091_v28 = vpop.f32.mrf.mxu0  ;;  %v1347_v29 = vpop.f32.mrf.mxu1 }
 0x197   : > { %v1499_v32 = vmax.f32 %v1497_v22, %v1498_v26  ;;  %v1603_v33 = vmax.f32 %v1601_v23, %v1602_v27  ;;  %v1504_v34 = vmax.f32 %v1088_v20, %v1091_v28  ;;  %v1608_v35 = vmax.f32 %v1344_v21, %v1347_v29 }
 0x198   : > { %v2232_v36 = vpop.f32.mrf.mxu0  ;;  %v2296_v37 = vpop.f32.mrf.mxu1 }
 0x199   : > { %v1500_v38 = vrot.slane %v1499_v32, 2  ;;  %v1604_v39 = vrot.slane %v1603_v33, 2  ;;  %v1505_v40 = vmax.f32 %v1504_v34, %v2228_v16  ;;  %v1609_v41 = vmax.f32 %v1608_v35, %v2292_v17 }
 0x19a   : > { %v1104_v42 = vpop.f32.mrf.mxu0  ;;  %v1360_v43 = vpop.f32.mrf.mxu1 }
 0x19b   : > { %v1501_v44 = vmax.f32 %v1499_v32, %v1500_v38  ;;  %v1605_v45 = vmax.f32 %v1603_v33, %v1604_v39  ;;  %v1506_v46 = vmax.f32 %v1505_v40, %v2229_v24  ;;  %v1610_v47 = vmax.f32 %v1609_v41, %v2293_v25 }
 0x19c   : > { %v2233_v48 = vpop.f32.mrf.mxu0  ;;  %v2297_v49 = vpop.f32.mrf.mxu1 }
 0x19d   : > { %v1502_v52 = vrot.slane %v1501_v44, 1  ;;  %v1606_v53 = vrot.slane %v1605_v45, 1  ;;  %v1507_v54 = vmax.f32 %v1506_v46, %v1104_v42  ;;  %v1611_v55 = vmax.f32 %v1610_v47, %v1360_v43 }
 0x19e   : > { %v1107_v56 = vpop.f32.mrf.mxu0  ;;  %v1363_v57 = vpop.f32.mrf.mxu1 }
 0x19f   : > { %v3054_v58 = vmax.f32 %v1501_v44, %v1502_v52  ;;  %v3056_v59 = vmax.f32 %v1605_v45, %v1606_v53  ;;  %v1508_v60 = vmax.f32 %v1507_v54, %v1107_v56  ;;  %v1612_v61 = vmax.f32 %v1611_v55, %v1363_v57 }
 0x1a0   : > { %v2236_v62 = vpop.f32.mrf.mxu0  ;;  %v2300_v63 = vpop.f32.mrf.mxu1 }
 0x1a1   : > { %v1509_v0 = vmax.f32 %v1508_v60, %v2232_v36  ;;  %v1613_v1 = vmax.f32 %v1612_v61, %v2296_v37 }
 0x1a2   : > { %v1120_v2 = vpop.f32.mrf.mxu0  ;;  %v1376_v3 = vpop.f32.mrf.mxu1 }
 0x1a3   : > { %v1510_v4 = vmax.f32 %v1509_v0, %v2233_v48  ;;  %v1614_v5 = vmax.f32 %v1613_v1, %v2297_v49 }
 0x1a4   : > { %v2237_v6 = vpop.f32.mrf.mxu0  ;;  %v2301_v7 = vpop.f32.mrf.mxu1 }
 0x1a5   : > { %v1511_v10 = vrot.slane %v1510_v4, 4  ;;  %v1615_v11 = vrot.slane %v1614_v5, 4 }
 0x1a6   : > { %v1123_v14 = vpop.f32.mrf.mxu0  ;;  %v1379_v15 = vpop.f32.mrf.mxu1 }
 0x1a7   : > { %v1512_v16 = vmax.f32 %v1510_v4, %v1511_v10  ;;  %v1616_v17 = vmax.f32 %v1614_v5, %v1615_v11  ;;  %v1517_v18 = vmax.f32 %v1120_v2, %v1123_v14  ;;  %v1621_v19 = vmax.f32 %v1376_v3, %v1379_v15 }
 0x1a8   : > { %v2240_v20 = vpop.f32.mrf.mxu0  ;;  %v2304_v21 = vpop.f32.mrf.mxu1 }
 0x1a9   : > { %v1513_v22 = vrot.slane %v1512_v16, 2  ;;  %v1617_v23 = vrot.slane %v1616_v17, 2  ;;  %v1518_v24 = vmax.f32 %v1517_v18, %v2236_v62  ;;  %v1622_v25 = vmax.f32 %v1621_v19, %v2300_v63 }
 0x1aa   : > { %v1136_v26 = vpop.f32.mrf.mxu0  ;;  %v1392_v27 = vpop.f32.mrf.mxu1 }
 0x1ab   : > { %v1514_v28 = vmax.f32 %v1512_v16, %v1513_v22  ;;  %v1618_v29 = vmax.f32 %v1616_v17, %v1617_v23  ;;  %v1519_v32 = vmax.f32 %v1518_v24, %v2237_v6  ;;  %v1623_v33 = vmax.f32 %v1622_v25, %v2301_v7 }
 0x1ac   : > { %v2241_v34 = vpop.f32.mrf.mxu0  ;;  %v2305_v35 = vpop.f32.mrf.mxu1 }
 0x1ad   : > { %v1515_v36 = vrot.slane %v1514_v28, 1  ;;  %v1619_v37 = vrot.slane %v1618_v29, 1  ;;  %v1520_v38 = vmax.f32 %v1519_v32, %v1136_v26  ;;  %v1624_v39 = vmax.f32 %v1623_v33, %v1392_v27 }
 0x1ae   : > { %v1139_v40 = vpop.f32.mrf.mxu0  ;;  %v1395_v41 = vpop.f32.mrf.mxu1 }
 0x1af   : > { %v3058_v42 = vmax.f32 %v1514_v28, %v1515_v36  ;;  %v3060_v43 = vmax.f32 %v1618_v29, %v1619_v37  ;;  %v1521_v44 = vmax.f32 %v1520_v38, %v1139_v40  ;;  %v1625_v45 = vmax.f32 %v1624_v39, %v1395_v41 }
 0x1b0   : > { %v2244_v46 = vpop.f32.mrf.mxu0  ;;  %v2308_v47 = vpop.f32.mrf.mxu1 }
 0x1b1   : > { %v1522_v48 = vmax.f32 %v1521_v44, %v2240_v20  ;;  %v1626_v49 = vmax.f32 %v1625_v45, %v2304_v21 }
 0x1b2   : > { %v1152_v52 = vpop.f32.mrf.mxu0  ;;  %v1408_v53 = vpop.f32.mrf.mxu1 }
 0x1b3   : > { %v1523_v54 = vmax.f32 %v1522_v48, %v2241_v34  ;;  %v1627_v55 = vmax.f32 %v1626_v49, %v2305_v35 }
 0x1b4   : > { %v2245_v56 = vpop.f32.mrf.mxu0  ;;  %v2309_v57 = vpop.f32.mrf.mxu1 }
 0x1b5   : > { %v1524_v60 = vrot.slane %v1523_v54, 4  ;;  %v1628_v61 = vrot.slane %v1627_v55, 4 }
 0x1b6   : > { %v1155_v62 = vpop.f32.mrf.mxu0  ;;  %v1411_v63 = vpop.f32.mrf.mxu1 }
 0x1b7   : > { %v1525_v0 = vmax.f32 %v1523_v54, %v1524_v60  ;;  %v1629_v1 = vmax.f32 %v1627_v55, %v1628_v61  ;;  %v1530_v2 = vmax.f32 %v1152_v52, %v1155_v62  ;;  %v1634_v3 = vmax.f32 %v1408_v53, %v1411_v63 }
 0x1b8   : > { %v2248_v4 = vpop.f32.mrf.mxu0  ;;  %v2312_v5 = vpop.f32.mrf.mxu1 }
 0x1b9   : > { %v1526_v6 = vrot.slane %v1525_v0, 2  ;;  %v1630_v7 = vrot.slane %v1629_v1, 2  ;;  %v1531_v10 = vmax.f32 %v1530_v2, %v2244_v46  ;;  %v1635_v11 = vmax.f32 %v1634_v3, %v2308_v47 }
 0x1ba   : > { %v1168_v14 = vpop.f32.mrf.mxu0  ;;  %v1424_v15 = vpop.f32.mrf.mxu1 }
 0x1bb   : > { %v1527_v16 = vmax.f32 %v1525_v0, %v1526_v6  ;;  %v1631_v17 = vmax.f32 %v1629_v1, %v1630_v7  ;;  %v1532_v18 = vmax.f32 %v1531_v10, %v2245_v56  ;;  %v1636_v19 = vmax.f32 %v1635_v11, %v2309_v57 }
 0x1bc   : > { %v2249_v20 = vpop.f32.mrf.mxu0  ;;  %v2313_v21 = vpop.f32.mrf.mxu1 }
 0x1bd   : > { %v1528_v22 = vrot.slane %v1527_v16, 1  ;;  %v1632_v23 = vrot.slane %v1631_v17, 1  ;;  %v1533_v24 = vmax.f32 %v1532_v18, %v1168_v14  ;;  %v1637_v25 = vmax.f32 %v1636_v19, %v1424_v15 }
 0x1be   : > { %v1171_v26 = vpop.f32.mrf.mxu0  ;;  %v1427_v27 = vpop.f32.mrf.mxu1 }
 0x1bf   : > { %v3062_v28 = vmax.f32 %v1527_v16, %v1528_v22  ;;  %v3064_v29 = vmax.f32 %v1631_v17, %v1632_v23  ;;  %v1534_v32 = vmax.f32 %v1533_v24, %v1171_v26  ;;  %v1638_v33 = vmax.f32 %v1637_v25, %v1427_v27 }
 0x1c1   : > { %v1535_v34 = vmax.f32 %v1534_v32, %v2248_v4  ;;  %v1639_v35 = vmax.f32 %v1638_v33, %v2312_v5 }
 0x1c3   : > { %v1536_v36 = vmax.f32 %v1535_v34, %v2249_v20  ;;  %v1640_v37 = vmax.f32 %v1639_v35, %v2313_v21 }
 0x1c5   : > { %v1537_v38 = vrot.slane %v1536_v36, 4  ;;  %v1641_v39 = vrot.slane %v1640_v37, 4 }
 0x1c7   : > { %v1538_v40 = vmax.f32 %v1536_v36, %v1537_v38  ;;  %v1642_v41 = vmax.f32 %v1640_v37, %v1641_v39 }
 0x1c9   : > { %v1539_v44 = vrot.slane %v1538_v40, 2  ;;  %v1643_v45 = vrot.slane %v1642_v41, 2 }
 0x1cb   : > { %v1540_v46 = vmax.f32 %v1538_v40, %v1539_v44  ;;  %v1644_v47 = vmax.f32 %v1642_v41, %v1643_v45  ;;  %1650 = sbr.rel (%p2068_p3) target bundleno = 473 (0x1d9), region = 56 }
 0x1cd   : > { %v1541_v48 = vrot.slane %v1540_v46, 1  ;;  %v1645_v49 = vrot.slane %v1644_v47, 1 }
 0x1cf   : > { %v1542_v52 = vmax.f32 %v1540_v46, %v1541_v48  ;;  %v1646_v53 = vmax.f32 %v1644_v47, %v1645_v49 }
 0x1d0   : > { %vm1667_vm0 = vcmask 1041409   ;;  %vm1669_vm1 = vcmask 1042434   ;;  %vm1671_vm2 = vcmask 1043459   ;;  %vm1673_vm3 = vcmask 1044484  }
 0x1d1   : > { %v1668_v54 = vsel %vm1667_vm0, %v3042_v50, %v3038_v8  ;;  %vm1675_vm4 = vcmask 1045509   ;;  %v1681_v56 = vsel %vm1667_vm0, %v3044_v51, %v3040_v9  ;;  %vm1677_vm5 = vcmask 1046534  }
 0x1d2   : > { %v1670_v55 = vsel %vm1669_vm1, %v3046_v30, %v1668_v54  ;;  %v1682_v60 = vsel %vm1669_vm1, %v3048_v31, %v1681_v56  ;;  %vm1679_vm6 = vcmask 1047559  }
 0x1d3   : > { %v1672_v57 = vsel %vm1671_vm2, %v3050_v12, %v1670_v55  ;;  %v1683_v62 = vsel %vm1671_vm2, %v3052_v13, %v1682_v60 }
 0x1d4   : > { %v1674_v61 = vsel %vm1673_vm3, %v3054_v58, %v1672_v57  ;;  %v1684_v0 = vsel %vm1673_vm3, %v3056_v59, %v1683_v62 }
 0x1d5   : > { %v1676_v63 = vsel %vm1675_vm4, %v3058_v42, %v1674_v61  ;;  %v1685_v2 = vsel %vm1675_vm4, %v3060_v43, %v1684_v0 }
 0x1d6   : > { %v1678_v1 = vsel %vm1677_vm5, %v3062_v28, %v1676_v63  ;;  %v1686_v4 = vsel %vm1677_vm5, %v3064_v29, %v1685_v2 }
 0x1d7   : > { %v1680_v3 = vsel %vm1679_vm6, %v1542_v52, %v1678_v1  ;;  %v1687_v5 = vsel %vm1679_vm6, %v1646_v53, %v1686_v4 }
 0x1d8   : > { %1690 = vst [vmem:[#allocation2] sm:$0xff] %v1680_v3  ;;  %1691 = vst [vmem:[#allocation2 + $0x8] sm:$0xff] %v1687_v5 }
 0x1d9 PF: > { %p2069_p12 = scmp.le.s32.totalorder %s2734_s24, 0 }
 0x1db   : > { %1695 = sbr.rel (%p2069_p12) target bundleno = 491 (0x1eb), region = 60 }
 0x1e0   : > { %vm1714_vm7 = vcmask 1041409   ;;  %vm1716_vm8 = vcmask 1042434   ;;  %vm1718_vm9 = vcmask 1043459   ;;  %vm1720_vm10 = vcmask 1044484   ;;  %v1696_v17 = vld [vmem:[#allocation2] sm:$0xff]  ;;  %v1697_v18 = vld [vmem:[#allocation2 + $0x8] sm:$0xff] }
 0x1e1   : > { %v1715_v6 = vsel %vm1714_vm7, %v3042_v50, %v3038_v8  ;;  %vm1722_vm11 = vcmask 1045509   ;;  %v1728_v10 = vsel %vm1714_vm7, %v3044_v51, %v3040_v9  ;;  %vm1724_vm12 = vcmask 1046534  }
 0x1e2   : > { %v1717_v7 = vsel %vm1716_vm8, %v3046_v30, %v1715_v6  ;;  %v1729_v14 = vsel %vm1716_vm8, %v3048_v31, %v1728_v10  ;;  %vm1726_vm13 = vcmask 1047559  }
 0x1e3   : > { %v1719_v11 = vsel %vm1718_vm9, %v3050_v12, %v1717_v7  ;;  %v1730_v16 = vsel %vm1718_vm9, %v3052_v13, %v1729_v14 }
 0x1e4   : > { %v1721_v15 = vsel %vm1720_vm10, %v3054_v58, %v1719_v11  ;;  %v1731_v50 = vsel %vm1720_vm10, %v3056_v59, %v1730_v16 }
 0x1e5   : > { %v1723_v8 = vsel %vm1722_vm11, %v3058_v42, %v1721_v15  ;;  %v1732_v9 = vsel %vm1722_vm11, %v3060_v43, %v1731_v50 }
 0x1e6   : > { %v1725_v30 = vsel %vm1724_vm12, %v3062_v28, %v1723_v8  ;;  %v1733_v12 = vsel %vm1724_vm12, %v3064_v29, %v1732_v9 }
 0x1e7   : > { %v1727_v51 = vsel %vm1726_vm13, %v1542_v52, %v1725_v30  ;;  %v1734_v31 = vsel %vm1726_vm13, %v1646_v53, %v1733_v12 }
 0x1e8   : > { %v1737_v19 = vmax.f32 %v1696_v17, %v1727_v51  ;;  %v1738_v20 = vmax.f32 %v1697_v18, %v1734_v31 }
 0x1ea   : > { %1739 = vst [vmem:[#allocation2] sm:$0xff] %v1737_v19  ;;  %1740 = vst [vmem:[#allocation2 + $0x8] sm:$0xff] %v1738_v20 }
 0x1eb PF: > { %p2070_p5 = scmp.ne.s32.totalorder %s2734_s24, 1 }
 0x1ed   : > { %1744 = sbr.rel (%p2070_p5) target bundleno = 729 (0x2d9), region = 64 }
 0x1f2   : > { %v1773_v13 = vld [vmem:[#allocation8 + $0x78] sm:$0xff]  ;;  %v1772_v58 = vld [vmem:[#allocation8 + $0x70] sm:$0xff]  ;;  %v1771_v59 = vld [vmem:[#allocation8 + $0x68] sm:$0xff] }
 0x1f3   : > { %2314 = vmatprep.subr.mxu0 %v1773_v13  ;;  %v1770_v42 = vld [vmem:[#allocation8 + $0x60] sm:$0xff]  ;;  %v1745_v43 = vld [vmem:[#allocation2] sm:$0xff]  ;;  %v1769_v21 = vld [vmem:[#allocation8 + $0x58] sm:$0xff] }
 0x1f4   : > { %2315 = vmatpush3.msra.mxu0 %v1773_v13  ;;  %v2071_v22 = vld [vmem:[%s3181_s2] ss:$0 sm:$0xff]  ;;  %v1767_v26 = vld [vmem:[#allocation8 + $0x48] sm:$0xff]  ;;  %v1766_v27 = vld [vmem:[#allocation8 + $0x40] sm:$0xff] }
 0x1f5   : > { %2316 = vmatprep.subr.mxu0 %v1772_v58  ;;  %v1754_v23 = vadd.f32 %v2071_v22, %v1745_v43  ;;  %v1768_v24 = vld [vmem:[#allocation8 + $0x50] sm:$0xff]  ;;  %v1765_v28 = vld [vmem:[#allocation8 + $0x38] sm:$0xff]  ;;  %v1763_v32 = vld [vmem:[#allocation8 + $0x28] sm:$0xff] }
 0x1f6   : > { %2317 = vmatpush3.msra.mxu0 %v1772_v58  ;;  %v1764_v29 = vld [vmem:[#allocation8 + $0x30] sm:$0xff]  ;;  %v1762_v33 = vld [vmem:[#allocation8 + $0x20] sm:$0xff]  ;;  %v1761_v34 = vld [vmem:[#allocation8 + $0x18] sm:$0xff] }
 0x1f7   : > { %2318 = vmatprep.subr.mxu0 %v1771_v59  ;;  %v1756_v25 = vmax.f32 %v1754_v23, 0.0  ;;  %v1746_v35 = vld [vmem:[#allocation2 + $0x8] sm:$0xff]  ;;  %v1760_v36 = vld [vmem:[#allocation8 + $0x10] sm:$0xff]  ;;  %v1759_v38 = vld [vmem:[#allocation8 + $0x8] sm:$0xff] }
 0x1f8   : > { %2319 = vmatpush3.msra.mxu0 %v1771_v59  ;;  %v1755_v37 = vadd.f32 %v2071_v22, %v1746_v35  ;;  %v1758_v39 = vld [vmem:[#allocation8] sm:$0xff]  ;;  %v2072_v41 = vld [vmem:[%s3183_s4] ss:$0 sm:$0xff] }
 0x1f9   : > { %2320 = vmatprep.subr.mxu0 %v1770_v42  ;;  %2346 = vmatprep.mubr.f32.mxu0 %v1756_v25 }
 0x1fa   : > { %2321 = vmatpush3.msra.mxu0 %v1770_v42  ;;  %v1757_v40 = vmax.f32 %v1755_v37, 0.0 }
 0x1fb   : > { %2322 = vmatprep.subr.mxu0 %v1769_v21 }
 0x1fc   : > { %2323 = vmatpush3.msra.mxu0 %v1769_v21 }
 0x1fd   : > { %2324 = vmatprep.subr.mxu0 %v1768_v24 }
 0x1fe   : > { %2325 = vmatpush3.msra.mxu0 %v1768_v24 }
 0x1ff   : > { %2326 = vmatprep.subr.mxu0 %v1767_v26 }
 0x200   : > { %2327 = vmatpush3.msra.mxu0 %v1767_v26 }
 0x201   : > { %2328 = vmatprep.subr.mxu0 %v1766_v27 }
 0x202   : > { %2329 = vmatpush3.msra.mxu0 %v1766_v27 }
 0x203   : > { %2330 = vmatprep.subr.mxu0 %v1765_v28 }
 0x204   : > { %2331 = vmatpush3.msra.mxu0 %v1765_v28 }
 0x205   : > { %2332 = vmatprep.subr.mxu0 %v1764_v29 }
 0x206   : > { %2333 = vmatpush3.msra.mxu0 %v1764_v29 }
 0x207   : > { %2334 = vmatprep.subr.mxu0 %v1763_v32 }
 0x208   : > { %2335 = vmatpush3.msra.mxu0 %v1763_v32 }
 0x209   : > { %2336 = vmatprep.subr.mxu0 %v1762_v33 }
 0x20a   : > { %2337 = vmatpush3.msra.mxu0 %v1762_v33 }
 0x20b   : > { %2338 = vmatprep.subr.mxu0 %v1761_v34 }
 0x20c   : > { %2339 = vmatpush3.msra.mxu0 %v1761_v34 }
 0x20d   : > { %2340 = vmatprep.subr.mxu0 %v1760_v36 }
 0x20e   : > { %2341 = vmatpush3.msra.mxu0 %v1760_v36 }
 0x20f   : > { %2342 = vmatprep.subr.mxu0 %v1759_v38 }
 0x210   : > { %2343 = vmatpush3.msra.mxu0 %v1759_v38 }
 0x211   : > { %2344 = vmatprep.subr.mxu0 %v1758_v39 }
 0x212   : > { %2345 = vmatpush3.msra.mxu0 %v1758_v39 }
 0x213   : > { %2347 = vmatmul.mubr.f32.vlgmr.msra.gmra.mxu0 %v1757_v40 }
 0x2d3   : > { %v2348_v44 = vpop.f32.mrf.mxu0 }
 0x2d4   : > { %v1853_v45 = vadd.f32 %v2348_v44, %v2072_v41 }
 0x2d5   : > { %v1847_v46 = vpop.f32.mrf.mxu0 }
 0x2d6   : > { %1857 = vst [vmem:[%s3067_s11 + $0x8] sm:$0xff] %v1853_v45  ;;  %v1848_v47 = vadd.f32 %v2072_v41, %v1847_v46 }
 0x2d8   : > { %1856 = vst [vmem:[%s3067_s11] sm:$0xff] %v1848_v47 }
 0x2d9 PF: > { %s2079_s18 = sshll.u32 %s2738_s25, 8  ;;  %s1872_s9 = sshll.u32 %s3067_s11, 4  ;;  %s3115_s9 = int_to_ptr.vmem [resolvable:$true] %s1872_s9 }
 0x2da   : > { %s3112_s8 = scalar_lea.hbm %s3184_s5, %s2079_s18  ;;  %s3119_s6 = scalar_lea.sflag [#allocation5], %s311_s3 }
 0x2db   : > { %s2626_s12 = scalar_lea.vmem %s3115_s9, 256  ;;  %p3214_p10 = scmp.ne.s32.totalorder %s3203_s16, 0 }
 0x2dc   : > { %p2627_p9 = scmp.ne.s32.totalorder %s3115_s9, %s2626_s12  ;;  %s2764_s25 = smov [#allocation9]  }
 0x2dd   : > { %s2630_s15 = sshll.u32 %s2764_s25, 4  ;;  %s2631_s15 = int_to_ptr.vmem [resolvable:$false] %s2630_s15 }
 0x2de   : > { %p2628_p2 = pnand %p2627_p9, %p3214_p10  ;;  %s2632_s1 = scalar_lea.vmem %s2631_s15, 512 }
 0x2df   : > { %p2633_p11 = scmp.lt.s32.totalorder %s3115_s9, %s2631_s15  ;;  %p2634_p13 = scmp.lt.s32.totalorder %s2632_s1, %s2626_s12 }
 0x2e0   : > { %p2629_p8 = pneg %p2628_p2 }
 0x2e1   : > { %p2635_p1 = por %p2634_p13, %p2633_p11 }
 0x2e3   : > { %p2636_p4 = pnand %p2635_p1, %p2629_p8 }
 0x2e5   : > { %2639 = shalt.err (!%p2636_p4)
}
 0x2e6   : > { %s2640_s21 = scalar_lea.hbm %s3112_s8, 256  ;;  %s2644_s3 = scalar_lea.hbm %s3184_s5, 512 }
 0x2e7   : > { %p2641_p0 = scmp.ne.s32.totalorder %s3112_s8, %s2640_s21  ;;  %p2645_p3 = scmp.lt.s32.totalorder %s3112_s8, %s3184_s5 }
 0x2e8   : > { %p2646_p12 = scmp.lt.s32.totalorder %s2644_s3, %s2640_s21 }
 0x2e9   : > { %p2642_p6 = pnand %p2641_p0, %p3214_p10 }
 0x2ea   : > { %p2647_p5 = por %p2646_p12, %p2645_p3 }
 0x2eb   : > { %p2643_p7 = pneg %p2642_p6 }
 0x2ed   : > { %p2648_p9 = pnand %p2647_p5, %p2643_p7 }
 0x2ef   : > { %2651 = shalt.err (!%p2648_p9)
}
 0x2f0   : > { %s2765_s13 = smov 128   ;;  %s2766_s29 = smov 8  }
 0x2f1   : > { %2382 = dma.vmem_to_hbm [thread:$0]  (%p3214_p10), %s3115_s9, 256, %s3112_s8, %s3119_s6, %s2765_s13, %s2765_s13, %s2766_s29  }
 0x2f2 PF: > { %s3215_s24 = sld [smem:[#allocation16_spill]]  ;;  %p2399_p2 = scmp.ge.s32.totalorder %s2750_s28, 2 }
 0x2f3   : > { %s3216_s7 = sld [smem:[#allocation22_spill]] }
 0x2f8   : > { %s1887_s18 = sand.u32 1, %s3215_s24  }
 0x2f9   : > { %p3217_p8 = scmp.ne.s32.totalorder %s3216_s7, 0  ;;  %s1888_s30 = scalar_lea.sflag [#allocation5], %s1887_s18 }
 0x2fb   : > { %p2392_p11 = pnand %p2399_p2, %p3217_p8 }
 0x2fd   : > { %p2393_p13 = pneg %p2392_p11 }
 0x2ff   : > { %2705 = dma.done.wait (%p2393_p13), %s1888_s30, 256  }
 0x300   : > { %2707 = vsyncadd (%p2393_p13), %s1888_s30, 4294967040  ;;  %s22_s28 = sadd.s32 1, %s2750_s28   ;;  %s3218_s17 = sld [smem:[#allocation17_spill]] }
 0x301   : > { %p19_p1 = scmp.ge.s32.totalorder %s22_s28, 6   ;;  %s3219_s20 = sld [smem:[#allocation20_spill]] }
 0x302   : > { %s3220_s16 = sld [smem:[#allocation21_spill]]  ;;  %s3223_s18 = smov %s2714_s19 }
 0x303   : > { %s3221_s8 = sld [smem:[#allocation18_spill]]  ;;  %s3225_s21 = smov %s2726_s22 }
 0x304   : > { %s3222_s9 = sld [smem:[#allocation19_spill]]  ;;  %s3226_s22 = smov %s2730_s23 }
 0x305   : > { %s3228_s24 = smov %s2742_s26  ;;  %s3229_s25 = smov %s2746_s27 }
 0x306   : > { %s3224_s19 = smov %s3218_s17  ;;  %21 = sbr.rel (!%p19_p1) target bundleno = 13 (0xd), region = 110 }
 0x308   : > { %s3227_s23 = smov %s3220_s16 }
 0x309   : > { %s3230_s26 = smov %s3221_s8 }
 0x30a   : > { %s3231_s27 = smov %s3222_s9 }
 0x30b   :  { %1893 = vsyncpa [#allocation4], 1 }
 0x30c   :  { %1895 = vsyncpa [#allocation4 + $0x1], 1 }
 0x30d   :  { %1896 = vsyncpa [#allocation7], 1 }
 0x30e   :  { %1897 = vsyncpa [#allocation5], 1 }
 0x30f   :  { %1899 = vsyncpa [#allocation5 + $0x1], 1 }

</bundles_post_ra>
